<compile_context>
chip_gen: v7x
topology: tpu7x:2x2x1
jax: 0.10.0
libtpu: 0.0.40
codegen_flags: <defaults>
</compile_context>

<pallas_src>
import jax
import jax.numpy as jnp
from jax.experimental import pallas as pl
from jax.experimental.pallas import tpu as pltpu


def _projection_kernel(x_ref, w_ref, o_ref):
    """One (TB, D_in) batch tile -> (TB, D_out) L2-normalized projection."""
    # norm_modality: f32 row-wise L2 normalization of the backbone embedding.
    x = x_ref[...].astype(jnp.float32)
    x = x * jax.lax.rsqrt(jnp.sum(x * x, axis=-1, keepdims=True))

    # Linear(vision_dim -> proj_dim, bias=False): both operands bf16 -> native
    # MXU path, f32 accumulation.
    y = jnp.dot(x.astype(jnp.bfloat16), w_ref[...],
                preferred_element_type=jnp.float32)

    # norm_projection: f32 row-wise L2 normalization (rsqrt-multiply on EUP).
    y = y * jax.lax.rsqrt(jnp.sum(y * y, axis=-1, keepdims=True))
    o_ref[...] = y.astype(o_ref.dtype)


def _round_up(x, m):
    return ((x + m - 1) // m) * m


def _pick_batch_tile(B, batch_tile):
    """8-aligned batch tile <= batch_tile; >=2 grid steps when B >= 16."""
    if B < 8:
        return B                               # full-extent block (allowed)
    tb = min(batch_tile, max(8, (B // 8) * 8))  # multiple of 8, <= B
    if B >= 16:
        # give the grid >= 2 steps so the "parallel" axis can shard across
        # v7x's two TensorCores and the DMA pipeline has work to overlap.
        tb = min(tb, _round_up(pl.cdiv(B, 2), 8))
    return tb


def projection_head_vision(embed, w_t, *, batch_tile=512, out_dtype=None):
    """ProjectionLayer forward.

    embed: (B, D_in) backbone embedding (f32 or bf16).
    w_t:   (D_in, D_out) pre-transposed projection weight (bf16).
    """
    B, D_in = embed.shape
    D_in_w, D_out = w_t.shape
    assert D_in == D_in_w
    if out_dtype is None:
        out_dtype = embed.dtype

    tb = _pick_batch_tile(B, batch_tile)
    grid = (pl.cdiv(B, tb),)   # ragged last block handled by Pallas; rows are
                               # independent so padded rows are simply discarded.

    return pl.pallas_call(
        _projection_kernel,
        out_shape=jax.ShapeDtypeStruct((B, D_out), out_dtype),
        grid=grid,
        in_specs=[
            pl.BlockSpec((tb, D_in), lambda i: (i, 0)),
            # Constant block index -> weight DMA'd into VMEM once, stays resident.
            pl.BlockSpec((D_in, D_out), lambda i: (0, 0)),
        ],
        out_specs=pl.BlockSpec((tb, D_out), lambda i: (i, 0)),
        compiler_params=pltpu.CompilerParams(
            dimension_semantics=("parallel",)),
    )(embed, w_t)


def prepare_projection_weight(weight, dtype=jnp.bfloat16):
    """ONE-TIME parameter prep (outside the per-forward path).

    weight: torch.nn.Linear layout (out_features, in_features) = (proj_dim, vision_dim)
    returns (vision_dim, proj_dim) stored in `dtype` (bf16 by default).
    """
    return jnp.asarray(weight).T.astype(dtype)


def init_linear_weight(key, out_features, in_features, dtype=jnp.float32):
    """Deterministic torch.nn.Linear-style init: U(-1/sqrt(fan_in), 1/sqrt(fan_in))."""
    bound = 1.0 / jnp.sqrt(jnp.asarray(in_features, dtype=jnp.float32))
    w = jax.random.uniform(key, (out_features, in_features),
                           minval=-bound, maxval=bound, dtype=jnp.float32)
    return w.astype(dtype)


def vision_model_forward(embed, w_prepared):
    """VisionModel.forward after the backbone.

    embed:      (B, vision_dim)        -- output of self.model(pixel_values)
    w_prepared: (vision_dim, proj_dim) -- from prepare_projection_weight(torch_weight)
    returns (B, proj_dim) L2-normalized projected embedding.
    """
    return projection_head_vision(embed, w_prepared)


def _reference_matched(embed, w_bf16):
    """Plain-JAX reference following the exact same precision path as the kernel."""
    xn = embed.astype(jnp.float32)
    xn = xn / jnp.linalg.norm(xn, axis=-1, keepdims=True)
    y = jnp.dot(xn.astype(jnp.bfloat16), w_bf16,
                preferred_element_type=jnp.float32)
    return y / jnp.linalg.norm(y, axis=-1, keepdims=True)


def _reference_f32(embed, w_f32):
    """Full-f32 PyTorch-semantics reference (norm -> linear -> norm)."""
    xn = embed / jnp.linalg.norm(embed, axis=-1, keepdims=True)
    y = xn @ w_f32
    return y / jnp.linalg.norm(y, axis=-1, keepdims=True)


if __name__ == "__main__":
    VISION_DIM = 1024
    PROJ_DIM = 512

    key = jax.random.PRNGKey(0)
    k_embed, k_embed2, k_w = jax.random.split(key, 3)

    # torch.nn.Linear(1024, 512, bias=False) weight in torch (out, in) layout ...
    weight_f32 = init_linear_weight(k_w, PROJ_DIM, VISION_DIM)
    # ... prepared ONCE: transpose + bf16 cast (not done per forward call).
    w_prepared = prepare_projection_weight(weight_f32)
    w_f32_t = w_prepared.astype(jnp.float32)

    # Case 1: tiny demo batch (full-extent block, grid=(1,)).
    B1 = 2
    embed1 = jax.random.normal(k_embed, (B1, VISION_DIM), dtype=jnp.float32)
    out1 = jax.block_until_ready(vision_model_forward(embed1, w_prepared))
    assert out1.shape == (B1, PROJ_DIM)
    ref1 = _reference_matched(embed1, w_prepared)
    assert jnp.allclose(out1, ref1, atol=1e-4, rtol=1e-4), \
        float(jnp.max(jnp.abs(out1 - ref1)))
    ref1_f32 = _reference_f32(embed1, w_f32_t)
    assert jnp.allclose(out1, ref1_f32, atol=3e-3, rtol=3e-3), \
        float(jnp.max(jnp.abs(out1 - ref1_f32)))

    # Case 2: exercises the cdiv grid with a ragged last block (B=100 -> tb=56, grid=2).
    B2 = 100
    embed2 = jax.random.normal(k_embed2, (B2, VISION_DIM), dtype=jnp.float32)
    out2 = jax.block_until_ready(vision_model_forward(embed2, w_prepared))
    assert out2.shape == (B2, PROJ_DIM)
    ref2 = _reference_matched(embed2, w_prepared)
    assert jnp.allclose(out2, ref2, atol=1e-4, rtol=1e-4), \
        float(jnp.max(jnp.abs(out2 - ref2)))

    print("KERNEL_OK")
</pallas_src>

<mosaic_0001>
module attributes {stable_mosaic.version = 11 : i64} {
  func.func @_projection_kernel(%arg0: i32, %arg1: memref<2x1024xf32, #tpu.memory_space<vmem>>, %arg2: memref<1024x512xbf16, #tpu.memory_space<vmem>>, %arg3: memref<2x512xf32, #tpu.memory_space<vmem>>) attributes {dimension_semantics = [#tpu.dimension_semantics<parallel>], iteration_bounds = array<i64: 1>, scalar_prefetch = 0 : i64, scratch_operands = 0 : i64, tpu.core_type = #tpu.core_type<tc>, window_params = [{transform_indices = @transform_0, window_bounds = array<i64: 2, 1024>}, {pipeline_mode = #tpu.pipeline_mode<synchronous>, transform_indices = @transform_1, window_bounds = array<i64: 1024, 512>}, {transform_indices = @transform_2, window_bounds = array<i64: 2, 512>}]} {
    %c0 = arith.constant 0 : index
    %c0_0 = arith.constant 0 : index
    %0 = vector.load %arg1[%c0, %c0_0] : memref<2x1024xf32, #tpu.memory_space<vmem>>, vector<2x1024xf32>
    %1 = arith.mulf %0, %0 : vector<2x1024xf32>
    %cst = arith.constant dense<0.000000e+00> : vector<2xf32>
    %2 = vector.multi_reduction <add>, %1, %cst [1] : vector<2x1024xf32> to vector<2xf32>
    %3 = vector.shape_cast %2 : vector<2xf32> to vector<2x1xf32>
    %4 = math.rsqrt %3 : vector<2x1xf32>
    %5 = vector.broadcast %4 : vector<2x1xf32> to vector<2x1024xf32>
    %6 = arith.mulf %0, %5 : vector<2x1024xf32>
    %7 = arith.truncf %6 : vector<2x1024xf32> to vector<2x1024xbf16>
    %c0_1 = arith.constant 0 : index
    %c0_2 = arith.constant 0 : index
    %8 = vector.load %arg2[%c0_1, %c0_2] : memref<1024x512xbf16, #tpu.memory_space<vmem>>, vector<1024x512xbf16>
    %cst_3 = arith.constant dense<0.000000e+00> : vector<2x512xf32>
    %9 = tpu.matmul %7, %8, %cst_3 {dimension_numbers = #tpu.dot_dimension_numbers<[1], [0], [0], [1], [0, 0, 1, 1], [], []>} : vector<2x1024xbf16>, vector<1024x512xbf16>, vector<2x512xf32> -> vector<2x512xf32>
    %10 = arith.mulf %9, %9 : vector<2x512xf32>
    %cst_4 = arith.constant dense<0.000000e+00> : vector<2xf32>
    %11 = vector.multi_reduction <add>, %10, %cst_4 [1] : vector<2x512xf32> to vector<2xf32>
    %12 = vector.shape_cast %11 : vector<2xf32> to vector<2x1xf32>
    %13 = math.rsqrt %12 : vector<2x1xf32>
    %14 = vector.broadcast %13 : vector<2x1xf32> to vector<2x512xf32>
    %15 = arith.mulf %9, %14 : vector<2x512xf32>
    %c0_5 = arith.constant 0 : index
    %c0_6 = arith.constant 0 : index
    %16 = vector.load %arg3[%c0_5, %c0_6] : memref<2x512xf32, #tpu.memory_space<vmem>>, vector<2x512xf32>
    tpu.vector_store %arg3[%c0_5, %c0_6], %15 {strides = array<i32>} : memref<2x512xf32, #tpu.memory_space<vmem>>, vector<2x512xf32>,
    return
  }
  func.func @transform_0(%arg0: i32) -> (i32, i32) {
    %c0_i32 = arith.constant 0 : i32
    %c0_i32_0 = arith.constant 0 : i32
    return %arg0, %c0_i32 : i32, i32
  }
  func.func @transform_1(%arg0: i32) -> (i32, i32) {
    %c0_i32 = arith.constant 0 : i32
    %c0_i32_0 = arith.constant 0 : i32
    %c0_i32_1 = arith.constant 0 : i32
    return %c0_i32, %c0_i32_0 : i32, i32
  }
  func.func @transform_2(%arg0: i32) -> (i32, i32) {
    %c0_i32 = arith.constant 0 : i32
    %c0_i32_0 = arith.constant 0 : i32
    return %arg0, %c0_i32 : i32, i32
  }
}

</mosaic_0001>

<bundles_post_ra>
// kernel: tpu_custom_call.1
= control target key start
LH: loop header
LB: loop body
LE: loop exit
PB: predicated region body
PF: predicated region fallthrough
CT: control target
= control target key end

     0   :  { %7 = vsyncpa [#allocation3], 0  ;;  %s2962_s0 = inlined_call_operand.hbm [shape: f32[2,1024], index: 0, kind: input, shape index: {}]   ;;  %s2963_s1 = inlined_call_operand.hbm [shape: bf16[1024,512], index: 1, kind: input, shape index: {}]   ;;  %s2964_s2 = inlined_call_operand.hbm [shape: f32[2,512], index: 2, kind: output, shape index: {}]  }
   0x1   :  { %8 = vsyncpa [#allocation6], 0 }
   0x2   :  { %9 = vsyncpa [#allocation4], 0  ;;  %s2837_s9 = smov [#allocation2]   ;;  %s2838_s11 = smov [#allocation5]  }
   0x3   :  { %s16_s10 = sshll.u32 %s2837_s9, 4  ;;  %s25_s12 = sshll.u32 %s2838_s11, 4  ;;  %s17_s10 = int_to_ptr.vmem [resolvable:$true] %s16_s10  ;;  %s2859_s12 = int_to_ptr.vmem [resolvable:$true] %s25_s12 }
   0x4   :  { %s2765_s15 = scalar_lea.hbm %s2962_s0, 256 }
   0x5   :  { %p2766_p0 = scmp.ne.s32.totalorder %s2962_s0, %s2765_s15  ;;  %p2769_p1 = scmp.lt.u32.totalorder %s2765_s15, %s2962_s0 }
   0x7   :  { %p2771_p2 = pnand %p2769_p1, %p2766_p0 }
   0x9   :  { %2774 = shalt.err (!%p2771_p2)
}
   0xa   :  { %s2775_s20 = scalar_lea.vmem %s17_s10, 256  ;;  %p2780_p4 = scmp.lt.s32.totalorder %s17_s10, %s17_s10 }
   0xb   :  { %p2776_p3 = scmp.ne.s32.totalorder %s17_s10, %s2775_s20  ;;  %p2781_p5 = scmp.lt.s32.totalorder %s2775_s20, %s2775_s20 }
   0xd   :  { %p2782_p6 = por %p2781_p5, %p2780_p4 }
   0xf   :  { %p2783_p7 = pnand %p2782_p6, %p2776_p3 }
  0x11   :  { %2786 = shalt.err (!%p2783_p7)
}
  0x12   :  { %19 = dma.hbm_to_vmem [thread:$0]  %s2962_s0, 256, %s17_s10, [#allocation3]  }
  0x13   :  { %s2787_s25 = scalar_lea.hbm %s2963_s1, 32768 }
  0x14   :  { %p2788_p8 = scmp.ne.s32.totalorder %s2963_s1, %s2787_s25  ;;  %p2791_p9 = scmp.lt.u32.totalorder %s2787_s25, %s2963_s1 }
  0x16   :  { %p2793_p10 = pnand %p2791_p9, %p2788_p8 }
  0x18   :  { %2796 = shalt.err (!%p2793_p10)
}
  0x19   :  { %s2797_s30 = scalar_lea.vmem %s2859_s12, 32768  ;;  %p2802_p12 = scmp.lt.s32.totalorder %s2859_s12, %s2859_s12 }
  0x1a   :  { %p2798_p11 = scmp.ne.s32.totalorder %s2859_s12, %s2797_s30  ;;  %p2803_p13 = scmp.lt.s32.totalorder %s2797_s30, %s2797_s30 }
  0x1c   :  { %p2804_p0 = por %p2803_p13, %p2802_p12 }
  0x1e   :  { %p2805_p1 = pnand %p2804_p0, %p2798_p11 }
  0x20   :  { %2808 = shalt.err (!%p2805_p1)
}
  0x21   :  { %s2839_s0 = smov 256   ;;  %s2840_s3 = smov 16  }
  0x22   :  { %31 = dma.hbm_to_vmem [thread:$0]  %s2963_s1, 32768, %s2859_s12, [#allocation6], %s2839_s0, %s2839_s0, %s2840_s3  }
  0x23   :  { %2831 = dma.done.wait [#allocation3], 256  }
  0x24   :  { %2832 = vsyncadd [#allocation3], 4294967040 }
  0x25   :  { %2833 = dma.done.wait [#allocation6], 32768  }
  0x26   :  { %2834 = vsyncadd [#allocation6], 4294934528  ;;  %v48_v0 = vlaneseq  ;;  %v2841_v1 = vmov 1983009808   ;;  %v2895_v6 = vld [vmem:[#allocation2] sm:$0xff]  ;;  %v39_v7 = vld [vmem:[#allocation2 + $0x8] sm:$0xff] }
  0x27   :  { %v46_v2 = vunpack.c.l.s4 %v2841_v1  ;;  %v40_v8 = vmul.f32 %v2895_v6, %v2895_v6  ;;  %v41_v9 = vmul.f32 %v39_v7, %v39_v7  ;;  %v2376_v10 = vld [vmem:[#allocation5 + $0x4] ss:$16 sps:$4 sm:$0xff]   ;;  %v2378_v11 = vld [vmem:[#allocation5 + $0xc] ss:$16 sps:$4 sm:$0xff]   ;;  %v2380_v12 = vld [vmem:[#allocation5] ss:$16 sps:$4 sm:$0xff]  }
  0x28   :  { %v2890_v3 = vshrl.u32 %v48_v0, 7  ;;  %vm86_vm0 = vcmask 1041408   ;;  %1704 = vmatprep.subr.bf16.mxu0 %v2376_v10  ;;  %v2381_v15 = vld [vmem:[#allocation5 + $0x8] ss:$16 sps:$4 sm:$0xff]   ;;  %1868 = vmatprep.subr.bf16.mxu1 %v2378_v11  ;;  %v2382_v16 = vld [vmem:[#allocation5 + $0x24] ss:$16 sps:$4 sm:$0xff]  }
  0x29   :  { %v47_v4 = vunpack.c.0.s8 %v46_v2  ;;  %v44_v13 = vcombine.high %v40_v8, %v40_v8  ;;  %1705 = vmatpush1.bf16.msra.mxu0 %v2380_v12  ;;  %v61_v19 = vcombine.high %v41_v9, %v41_v9  ;;  %1869 = vmatpush1.bf16.msra.mxu1 %v2381_v15  ;;  %v2384_v21 = vld [vmem:[#allocation5 + $0x2c] ss:$16 sps:$4 sm:$0xff]   ;;  %v2386_v22 = vld [vmem:[#allocation5 + $0x20] ss:$16 sps:$4 sm:$0xff]   ;;  %v2387_v23 = vld [vmem:[#allocation5 + $0x28] ss:$16 sps:$4 sm:$0xff]  }
  0x2a   :  { %1706 = vmatprep.subr.bf16.mxu0 %v2382_v16  ;;  %v2388_v25 = vld [vmem:[#allocation5 + $0x44] ss:$16 sps:$4 sm:$0xff]   ;;  %1870 = vmatprep.subr.bf16.mxu1 %v2384_v21  ;;  %v2390_v29 = vld [vmem:[#allocation5 + $0x4c] ss:$16 sps:$4 sm:$0xff]   ;;  %v2392_v31 = vld [vmem:[#allocation5 + $0x40] ss:$16 sps:$4 sm:$0xff]  }
  0x2b   :  { %v2893_v5 = vsub.s32 %v47_v4, %v2890_v3  ;;  %v2393_v32 = vld [vmem:[#allocation5 + $0x48] ss:$16 sps:$4 sm:$0xff]   ;;  %v2394_v36 = vld [vmem:[#allocation5 + $0x64] ss:$16 sps:$4 sm:$0xff]   ;;  %v2396_v38 = vld [vmem:[#allocation5 + $0x6c] ss:$16 sps:$4 sm:$0xff]  }
  0x2c   :  { %v2398_v41 = vld [vmem:[#allocation5 + $0x60] ss:$16 sps:$4 sm:$0xff]   ;;  %v2399_v44 = vld [vmem:[#allocation5 + $0x68] ss:$16 sps:$4 sm:$0xff]   ;;  %v2400_v45 = vld [vmem:[#allocation5 + $0x84] ss:$16 sps:$4 sm:$0xff]  }
  0x2d   :  { %v51_v14 = vrot.slane %v40_v8, %v2893_v5  ;;  %v58_v17 = vrot.slane %v44_v13, %v2893_v5  ;;  %v68_v20 = vrot.slane %v41_v9, %v2893_v5  ;;  %1707 = vmatpush1.bf16.msra.mxu0 %v2386_v22  ;;  %v75_v33 = vrot.slane %v61_v19, %v2893_v5  ;;  %v2402_v47 = vld [vmem:[#allocation5 + $0x8c] ss:$16 sps:$4 sm:$0xff]   ;;  %v2404_v50 = vld [vmem:[#allocation5 + $0x80] ss:$16 sps:$4 sm:$0xff]   ;;  %v2405_v51 = vld [vmem:[#allocation5 + $0x88] ss:$16 sps:$4 sm:$0xff]  }
  0x2e   :  { %1871 = vmatpush1.bf16.msra.mxu1 %v2387_v23  ;;  %1708 = vmatprep.subr.bf16.mxu0 %v2388_v25  ;;  %v2406_v53 = vld [vmem:[#allocation5 + $0xa4] ss:$16 sps:$4 sm:$0xff]   ;;  %v2408_v55 = vld [vmem:[#allocation5 + $0xac] ss:$16 sps:$4 sm:$0xff]   ;;  %v2410_v57 = vld [vmem:[#allocation5 + $0xa0] ss:$16 sps:$4 sm:$0xff]  }
  0x2f   :  { %v59_v18 = vcombine.high %v51_v14, %v51_v14  ;;  %v87_v24 = vsel %vm86_vm0, %v51_v14, 0.0  ;;  %v60_v26 = vcombine.high %v58_v17, %v58_v17  ;;  %v90_v28 = vsel %vm86_vm0, %v58_v17, 0.0  ;;  %1872 = vmatprep.subr.bf16.mxu1 %v2390_v29  ;;  %v2411_v58 = vld [vmem:[#allocation5 + $0xa8] ss:$16 sps:$4 sm:$0xff]   ;;  %v2412_v59 = vld [vmem:[#allocation5 + $0xc4] ss:$16 sps:$4 sm:$0xff]  }
  0x30   :  { %v76_v34 = vcombine.high %v68_v20, %v68_v20  ;;  %v94_v39 = vsel %vm86_vm0, %v68_v20, 0.0  ;;  %v77_v42 = vcombine.high %v75_v33, %v75_v33  ;;  %v98_v48 = vsel %vm86_vm0, %v75_v33, 0.0  ;;  %v2414_v60 = vld [vmem:[#allocation5 + $0xcc] ss:$16 sps:$4 sm:$0xff]   ;;  %v2416_v61 = vld [vmem:[#allocation5 + $0xc0] ss:$16 sps:$4 sm:$0xff]  }
  0x31   :  { %v88_v27 = vsel %vm86_vm0, %v59_v18, 0.0  ;;  %v92_v35 = vsel %vm86_vm0, %v60_v26, 0.0  ;;  %1709 = vmatpush1.bf16.msra.mxu0 %v2392_v31  ;;  %v2417_v62 = vld [vmem:[#allocation5 + $0xc8] ss:$16 sps:$4 sm:$0xff]   ;;  %v2418_v63 = vld [vmem:[#allocation5 + $0xe4] ss:$16 sps:$4 sm:$0xff]  }
  0x32   :  { %v89_v30 = vadd.f32 %v88_v27, %v87_v24  ;;  %v96_v43 = vsel %vm86_vm0, %v76_v34, 0.0  ;;  %1873 = vmatpush1.bf16.msra.mxu1 %v2393_v32  ;;  %1710 = vmatprep.subr.bf16.mxu0 %v2394_v36  ;;  %v100_v52 = vsel %vm86_vm0, %v77_v42, 0.0  ;;  %v2420_v0 = vld [vmem:[#allocation5 + $0xec] ss:$16 sps:$4 sm:$0xff]   ;;  %v2422_v1 = vld [vmem:[#allocation5 + $0xe0] ss:$16 sps:$4 sm:$0xff]  }
  0x33   :  { %1874 = vmatprep.subr.bf16.mxu1 %v2396_v38  ;;  %v2423_v2 = vld [vmem:[#allocation5 + $0xe8] ss:$16 sps:$4 sm:$0xff]   ;;  %v2424_v4 = vld [vmem:[#allocation5 + $0x104] ss:$16 sps:$4 sm:$0xff]   ;;  %v2426_v7 = vld [vmem:[#allocation5 + $0x10c] ss:$16 sps:$4 sm:$0xff]  }
  0x34   :  { %v91_v37 = vadd.f32 %v90_v28, %v89_v30  ;;  %v2428_v8 = vld [vmem:[#allocation5 + $0x100] ss:$16 sps:$4 sm:$0xff]   ;;  %v2429_v9 = vld [vmem:[#allocation5 + $0x108] ss:$16 sps:$4 sm:$0xff]   ;;  %v2430_v10 = vld [vmem:[#allocation5 + $0x124] ss:$16 sps:$4 sm:$0xff]  }
  0x35   :  { %1711 = vmatpush1.bf16.msra.mxu0 %v2398_v41  ;;  %v2432_v11 = vld [vmem:[#allocation5 + $0x12c] ss:$16 sps:$4 sm:$0xff]   ;;  %v2434_v12 = vld [vmem:[#allocation5 + $0x120] ss:$16 sps:$4 sm:$0xff]   ;;  %v2435_v13 = vld [vmem:[#allocation5 + $0x128] ss:$16 sps:$4 sm:$0xff]  }
  0x36   :  { %v93_v40 = vadd.f32 %v92_v35, %v91_v37  ;;  %1875 = vmatpush1.bf16.msra.mxu1 %v2399_v44  ;;  %1712 = vmatprep.subr.bf16.mxu0 %v2400_v45  ;;  %v2436_v14 = vld [vmem:[#allocation5 + $0x144] ss:$16 sps:$4 sm:$0xff]   ;;  %v2438_v15 = vld [vmem:[#allocation5 + $0x14c] ss:$16 sps:$4 sm:$0xff]   ;;  %v2440_v16 = vld [vmem:[#allocation5 + $0x140] ss:$16 sps:$4 sm:$0xff]  }
  0x37   :  { %1876 = vmatprep.subr.bf16.mxu1 %v2402_v47  ;;  %v2441_v17 = vld [vmem:[#allocation5 + $0x148] ss:$16 sps:$4 sm:$0xff]   ;;  %v2442_v18 = vld [vmem:[#allocation5 + $0x164] ss:$16 sps:$4 sm:$0xff]   ;;  %v2444_v19 = vld [vmem:[#allocation5 + $0x16c] ss:$16 sps:$4 sm:$0xff]  }
  0x38   :  { %v95_v46 = vadd.f32 %v94_v39, %v93_v40  ;;  %v2446_v20 = vld [vmem:[#allocation5 + $0x160] ss:$16 sps:$4 sm:$0xff]   ;;  %v2447_v21 = vld [vmem:[#allocation5 + $0x168] ss:$16 sps:$4 sm:$0xff]   ;;  %v2448_v22 = vld [vmem:[#allocation5 + $0x184] ss:$16 sps:$4 sm:$0xff]  }
  0x39   :  { %1713 = vmatpush1.bf16.msra.mxu0 %v2404_v50  ;;  %v2450_v23 = vld [vmem:[#allocation5 + $0x18c] ss:$16 sps:$4 sm:$0xff]   ;;  %v2452_v24 = vld [vmem:[#allocation5 + $0x180] ss:$16 sps:$4 sm:$0xff]   ;;  %v2453_v25 = vld [vmem:[#allocation5 + $0x188] ss:$16 sps:$4 sm:$0xff]  }
  0x3a   :  { %v97_v49 = vadd.f32 %v96_v43, %v95_v46  ;;  %1877 = vmatpush1.bf16.msra.mxu1 %v2405_v51  ;;  %1714 = vmatprep.subr.bf16.mxu0 %v2406_v53  ;;  %v2454_v26 = vld [vmem:[#allocation5 + $0x1a4] ss:$16 sps:$4 sm:$0xff]   ;;  %v2456_v27 = vld [vmem:[#allocation5 + $0x1ac] ss:$16 sps:$4 sm:$0xff]   ;;  %v2458_v28 = vld [vmem:[#allocation5 + $0x1a0] ss:$16 sps:$4 sm:$0xff]  }
  0x3b   :  { %1878 = vmatprep.subr.bf16.mxu1 %v2408_v55  ;;  %v2459_v29 = vld [vmem:[#allocation5 + $0x1a8] ss:$16 sps:$4 sm:$0xff]   ;;  %v2460_v30 = vld [vmem:[#allocation5 + $0x1c4] ss:$16 sps:$4 sm:$0xff]   ;;  %v2462_v31 = vld [vmem:[#allocation5 + $0x1cc] ss:$16 sps:$4 sm:$0xff]  }
  0x3c   :  { %v99_v54 = vadd.f32 %v98_v48, %v97_v49  ;;  %v2464_v32 = vld [vmem:[#allocation5 + $0x1c0] ss:$16 sps:$4 sm:$0xff]   ;;  %v2465_v33 = vld [vmem:[#allocation5 + $0x1c8] ss:$16 sps:$4 sm:$0xff]   ;;  %v2466_v34 = vld [vmem:[#allocation5 + $0x1e4] ss:$16 sps:$4 sm:$0xff]  }
  0x3d   :  { %1715 = vmatpush1.bf16.msra.mxu0 %v2410_v57  ;;  %v2468_v35 = vld [vmem:[#allocation5 + $0x1ec] ss:$16 sps:$4 sm:$0xff]   ;;  %v2470_v36 = vld [vmem:[#allocation5 + $0x1e0] ss:$16 sps:$4 sm:$0xff]   ;;  %v2471_v37 = vld [vmem:[#allocation5 + $0x1e8] ss:$16 sps:$4 sm:$0xff]  }
  0x3e   :  { %v101_v56 = vadd.f32 %v100_v52, %v99_v54  ;;  %1879 = vmatpush1.bf16.msra.mxu1 %v2411_v58  ;;  %1716 = vmatprep.subr.bf16.mxu0 %v2412_v59  ;;  %v2474_v38 = vld [vmem:[#allocation5 + $0x204] ss:$16 sps:$4 sm:$0xff]   ;;  %v2477_v39 = vld [vmem:[#allocation5 + $0x20c] ss:$16 sps:$4 sm:$0xff]   ;;  %v2842_v41 = vmov 269488144  }
  0x3f   :  { %1880 = vmatprep.subr.bf16.mxu1 %v2414_v60  ;;  %v107_v42 = vunpack.c.l.s4 %v2842_v41  ;;  %v2472_v53 = vld [vmem:[#allocation5 + $0x200] ss:$16 sps:$4 sm:$0xff]   ;;  %v2475_v54 = vld [vmem:[#allocation5 + $0x208] ss:$16 sps:$4 sm:$0xff]   ;;  %v2480_v57 = vld [vmem:[#allocation5 + $0x224] ss:$16 sps:$4 sm:$0xff]  }
  0x40   :  { %102 = vadd.xlane.f32.xlu0 %v101_v56  ;;  %v2483_v58 = vld [vmem:[#allocation5 + $0x22c] ss:$16 sps:$4 sm:$0xff]   ;;  %v2481_v59 = vld [vmem:[#allocation5 + $0x228] ss:$16 sps:$4 sm:$0xff]   ;;  %v2486_v60 = vld [vmem:[#allocation5 + $0x244] ss:$16 sps:$4 sm:$0xff]  }
  0x41   :  { %1717 = vmatpush1.bf16.msra.mxu0 %v2416_v61  ;;  %v108_v43 = vunpack.c.0.s8 %v107_v42  ;;  %v2489_v61 = vld [vmem:[#allocation5 + $0x24c] ss:$16 sps:$4 sm:$0xff]   ;;  %v2544_v41 = vld [vmem:[#allocation5 + $0x380] ss:$16 sps:$4 sm:$0xff]   ;;  %v2547_v42 = vld [vmem:[#allocation5 + $0x388] ss:$16 sps:$4 sm:$0xff]  }
  0x42   :  { %1881 = vmatpush1.bf16.msra.mxu1 %v2417_v62  ;;  %1718 = vmatprep.subr.bf16.mxu0 %v2418_v63  ;;  %v2484_v62 = vld [vmem:[#allocation5 + $0x240] ss:$16 sps:$4 sm:$0xff]   ;;  %v2487_v63 = vld [vmem:[#allocation5 + $0x248] ss:$16 sps:$4 sm:$0xff]   ;;  %s2843_s1 = smov [#allocation7]  }
  0x43   :  { %1882 = vmatprep.subr.bf16.mxu1 %v2420_v0  ;;  %v111_v44 = vsub.s32 %v108_v43, %v2890_v3  ;;  %v2492_v0 = vld [vmem:[#allocation5 + $0x264] ss:$16 sps:$4 sm:$0xff]   ;;  %s2079_s6 = sshll.u32 %s2843_s1, 4  ;;  %s2080_s6 = int_to_ptr.vmem [resolvable:$true] %s2079_s6 }
  0x44   :  { %v2552_v43 = vld [vmem:[#allocation5 + $0x3a4] ss:$16 sps:$4 sm:$0xff]   ;;  %s2809_s7 = scalar_lea.vmem %s2080_s6, 128  ;;  %p2814_p3 = scmp.lt.s32.totalorder %s2080_s6, %s2080_s6 }
  0x45   :  { %1719 = vmatpush1.bf16.msra.mxu0 %v2422_v1  ;;  %v2495_v1 = vld [vmem:[#allocation5 + $0x26c] ss:$16 sps:$4 sm:$0xff]   ;;  %p2810_p2 = scmp.ne.s32.totalorder %s2080_s6, %s2809_s7  ;;  %p2815_p4 = scmp.lt.s32.totalorder %s2809_s7, %s2809_s7 }
  0x46   :  { %1883 = vmatpush1.bf16.msra.mxu1 %v2423_v2  ;;  %1720 = vmatprep.subr.bf16.mxu0 %v2424_v4  ;;  %v2490_v2 = vld [vmem:[#allocation5 + $0x260] ss:$16 sps:$4 sm:$0xff]   ;;  %v2493_v4 = vld [vmem:[#allocation5 + $0x268] ss:$16 sps:$4 sm:$0xff]  }
  0x47   :  { %1884 = vmatprep.subr.bf16.mxu1 %v2426_v7  ;;  %v2498_v7 = vld [vmem:[#allocation5 + $0x284] ss:$16 sps:$4 sm:$0xff]   ;;  %p2816_p5 = por %p2815_p4, %p2814_p3 }
  0x49   :  { %1721 = vmatpush1.bf16.msra.mxu0 %v2428_v8  ;;  %v2501_v8 = vld [vmem:[#allocation5 + $0x28c] ss:$16 sps:$4 sm:$0xff]   ;;  %p2817_p6 = pnand %p2816_p5, %p2810_p2 }
  0x4a   :  { %1885 = vmatpush1.bf16.msra.mxu1 %v2429_v9  ;;  %1722 = vmatprep.subr.bf16.mxu0 %v2430_v10  ;;  %v2496_v9 = vld [vmem:[#allocation5 + $0x280] ss:$16 sps:$4 sm:$0xff]   ;;  %v2499_v10 = vld [vmem:[#allocation5 + $0x288] ss:$16 sps:$4 sm:$0xff]  }
  0x4b   :  { %1886 = vmatprep.subr.bf16.mxu1 %v2432_v11  ;;  %v2504_v11 = vld [vmem:[#allocation5 + $0x2a4] ss:$16 sps:$4 sm:$0xff]  }
  0x4d   :  { %1723 = vmatpush1.bf16.msra.mxu0 %v2434_v12  ;;  %v2507_v12 = vld [vmem:[#allocation5 + $0x2ac] ss:$16 sps:$4 sm:$0xff]  }
  0x4e   :  { %1887 = vmatpush1.bf16.msra.mxu1 %v2435_v13  ;;  %1724 = vmatprep.subr.bf16.mxu0 %v2436_v14  ;;  %v2502_v13 = vld [vmem:[#allocation5 + $0x2a0] ss:$16 sps:$4 sm:$0xff]   ;;  %v2505_v14 = vld [vmem:[#allocation5 + $0x2a8] ss:$16 sps:$4 sm:$0xff]  }
  0x4f   :  { %1888 = vmatprep.subr.bf16.mxu1 %v2438_v15  ;;  %v2510_v15 = vld [vmem:[#allocation5 + $0x2c4] ss:$16 sps:$4 sm:$0xff]  }
  0x51   :  { %1725 = vmatpush1.bf16.msra.mxu0 %v2440_v16  ;;  %v2513_v16 = vld [vmem:[#allocation5 + $0x2cc] ss:$16 sps:$4 sm:$0xff]  }
  0x52   :  { %1889 = vmatpush1.bf16.msra.mxu1 %v2441_v17  ;;  %1726 = vmatprep.subr.bf16.mxu0 %v2442_v18  ;;  %v2508_v17 = vld [vmem:[#allocation5 + $0x2c0] ss:$16 sps:$4 sm:$0xff]   ;;  %v2511_v18 = vld [vmem:[#allocation5 + $0x2c8] ss:$16 sps:$4 sm:$0xff]  }
  0x53   :  { %1890 = vmatprep.subr.bf16.mxu1 %v2444_v19  ;;  %v2516_v19 = vld [vmem:[#allocation5 + $0x2e4] ss:$16 sps:$4 sm:$0xff]  }
  0x55   :  { %1727 = vmatpush1.bf16.msra.mxu0 %v2446_v20  ;;  %v2519_v20 = vld [vmem:[#allocation5 + $0x2ec] ss:$16 sps:$4 sm:$0xff]  }
  0x56   :  { %1891 = vmatpush1.bf16.msra.mxu1 %v2447_v21  ;;  %1728 = vmatprep.subr.bf16.mxu0 %v2448_v22  ;;  %v2514_v21 = vld [vmem:[#allocation5 + $0x2e0] ss:$16 sps:$4 sm:$0xff]   ;;  %v2517_v22 = vld [vmem:[#allocation5 + $0x2e8] ss:$16 sps:$4 sm:$0xff]  }
  0x57   :  { %1892 = vmatprep.subr.bf16.mxu1 %v2450_v23  ;;  %v2522_v23 = vld [vmem:[#allocation5 + $0x304] ss:$16 sps:$4 sm:$0xff]  }
  0x59   :  { %1729 = vmatpush1.bf16.msra.mxu0 %v2452_v24  ;;  %v2525_v24 = vld [vmem:[#allocation5 + $0x30c] ss:$16 sps:$4 sm:$0xff]  }
  0x5a   :  { %1893 = vmatpush1.bf16.msra.mxu1 %v2453_v25  ;;  %1730 = vmatprep.subr.bf16.mxu0 %v2454_v26  ;;  %v2520_v25 = vld [vmem:[#allocation5 + $0x300] ss:$16 sps:$4 sm:$0xff]   ;;  %v2523_v26 = vld [vmem:[#allocation5 + $0x308] ss:$16 sps:$4 sm:$0xff]  }
  0x5b   :  { %1894 = vmatprep.subr.bf16.mxu1 %v2456_v27  ;;  %v2528_v27 = vld [vmem:[#allocation5 + $0x324] ss:$16 sps:$4 sm:$0xff]  }
  0x5d   :  { %1731 = vmatpush1.bf16.msra.mxu0 %v2458_v28  ;;  %v2531_v28 = vld [vmem:[#allocation5 + $0x32c] ss:$16 sps:$4 sm:$0xff]  }
  0x5e   :  { %1895 = vmatpush1.bf16.msra.mxu1 %v2459_v29  ;;  %1732 = vmatprep.subr.bf16.mxu0 %v2460_v30  ;;  %v2526_v29 = vld [vmem:[#allocation5 + $0x320] ss:$16 sps:$4 sm:$0xff]   ;;  %v2529_v30 = vld [vmem:[#allocation5 + $0x328] ss:$16 sps:$4 sm:$0xff]  }
  0x5f   :  { %1896 = vmatprep.subr.bf16.mxu1 %v2462_v31  ;;  %v2534_v31 = vld [vmem:[#allocation5 + $0x344] ss:$16 sps:$4 sm:$0xff]  }
  0x61   :  { %1733 = vmatpush1.bf16.msra.mxu0 %v2464_v32  ;;  %v2537_v32 = vld [vmem:[#allocation5 + $0x34c] ss:$16 sps:$4 sm:$0xff]  }
  0x62   :  { %1897 = vmatpush1.bf16.msra.mxu1 %v2465_v33  ;;  %1734 = vmatprep.subr.bf16.mxu0 %v2466_v34  ;;  %v2532_v33 = vld [vmem:[#allocation5 + $0x340] ss:$16 sps:$4 sm:$0xff]   ;;  %v2535_v34 = vld [vmem:[#allocation5 + $0x348] ss:$16 sps:$4 sm:$0xff]  }
  0x63   :  { %1898 = vmatprep.subr.bf16.mxu1 %v2468_v35  ;;  %v2540_v35 = vld [vmem:[#allocation5 + $0x364] ss:$16 sps:$4 sm:$0xff]  }
  0x65   :  { %1735 = vmatpush1.bf16.msra.mxu0 %v2470_v36  ;;  %v2543_v36 = vld [vmem:[#allocation5 + $0x36c] ss:$16 sps:$4 sm:$0xff]  }
  0x66   :  { %1899 = vmatpush1.bf16.msra.mxu1 %v2471_v37  ;;  %1745 = vmatprep.subr.bf16.mxu0 %v2474_v38  ;;  %v2538_v37 = vld [vmem:[#allocation5 + $0x360] ss:$16 sps:$4 sm:$0xff]   ;;  %v2541_v38 = vld [vmem:[#allocation5 + $0x368] ss:$16 sps:$4 sm:$0xff]  }
  0x67   :  { %1909 = vmatprep.subr.bf16.mxu1 %v2477_v39  ;;  %v2546_v39 = vld [vmem:[#allocation5 + $0x384] ss:$16 sps:$4 sm:$0xff]  }
  0xcd   :  { %v103_v40 = vpop.xlane.xlu0 %102 }
  0xce   :  { %2760 = vrsqrt.f32 %v103_v40  ;;  %v2549_v40 = vld [vmem:[#allocation5 + $0x38c] ss:$16 sps:$4 sm:$0xff]  }
  0xd8   :  { %v2761_v45 = vpop.eup %2760 }
  0xd9   :  { %v2912_v46 = vrot.slane %v2761_v45, %v111_v44  ;;  %v2555_v44 = vld [vmem:[#allocation5 + $0x3ac] ss:$16 sps:$4 sm:$0xff]   ;;  %v2550_v45 = vld [vmem:[#allocation5 + $0x3a0] ss:$16 sps:$4 sm:$0xff]  }
  0xdb   :  { %v114_v47 = vmul.f32 %v2912_v46, %v2895_v6  ;;  %v2478_v6 = vld [vmem:[#allocation5 + $0x220] ss:$16 sps:$4 sm:$0xff]  }
  0xdd   :  { %v118_v48 = vcombine.high %v114_v47, %v114_v47  ;;  %v125_v49 = vrot.slane %v114_v47, %v2893_v5  ;;  %v2553_v47 = vld [vmem:[#allocation5 + $0x3a8] ss:$16 sps:$4 sm:$0xff]  }
  0xdf   :  { %v133_v50 = vcombine.high %v125_v49, %v125_v49  ;;  %v2918_v51 = vrot.slane %v118_v48, %v2893_v5  ;;  %v160_v3 = vpack.c.bf16 %v125_v49, %v125_v49  ;;  %v2558_v48 = vld [vmem:[#allocation5 + $0x3c4] ss:$16 sps:$4 sm:$0xff]   ;;  %v2561_v49 = vld [vmem:[#allocation5 + $0x3cc] ss:$16 sps:$4 sm:$0xff]  }
  0xe1   :  { %v161_v52 = vpack.c.bf16 %v133_v50, %v133_v50  ;;  %v134_v55 = vcombine.high %v2918_v51, %v2918_v51  ;;  %v2764_v50 = vld [vmem:[#allocation2 + $0x8] sm:$0xff] }
  0xe3   :  { %1736 = vmatprep.mubr.bf16.mxu0 %v161_v52  ;;  %1900 = vmatprep.mubr.bf16.mxu1 %v161_v52  ;;  %v163_v56 = vpack.c.bf16 %v134_v55, %v134_v55  ;;  %v2923_v52 = vmul.f32 %v2764_v50, %v2912_v46  ;;  %v2564_v55 = vld [vmem:[#allocation5 + $0x3e4] ss:$16 sps:$4 sm:$0xff]   ;;  %v2643_v50 = vld [vmem:[#allocation5 + $0x588] ss:$16 sps:$4 sm:$0xff]  }
  0xe4   :  { %1737 = vmatmul.mubr.bf16.vlgmr.msra.gmra.mrb[0].mxu0 %v160_v3  ;;  %1901 = vmatmul.mubr.bf16.vlgmr.msra.gmra.mrb[0].mxu1 %v160_v3  ;;  %v2567_v3 = vld [vmem:[#allocation5 + $0x3ec] ss:$16 sps:$4 sm:$0xff]   ;;  %v2570_v46 = vld [vmem:[#allocation5 + $0x404] ss:$16 sps:$4 sm:$0xff]  }
  0xe5   :  { %1746 = vmatpush1.bf16.msra.mxu0 %v2472_v53  ;;  %1910 = vmatpush1.bf16.msra.mxu1 %v2475_v54  ;;  %v2556_v53 = vld [vmem:[#allocation5 + $0x3c0] ss:$16 sps:$4 sm:$0xff]   ;;  %v2559_v54 = vld [vmem:[#allocation5 + $0x3c8] ss:$16 sps:$4 sm:$0xff]  }
  0xe6   :  { %1777 = vmatprep.mubr.bf16.mxu0 %v163_v56  ;;  %1941 = vmatprep.mubr.bf16.mxu1 %v163_v56  ;;  %v2927_v56 = vrot.slane %v2923_v52, %v2893_v5 }
  0xe7   :  { %1747 = vmatprep.subr.bf16.mxu0 %v2480_v57  ;;  %1911 = vmatprep.subr.bf16.mxu1 %v2483_v58  ;;  %v2562_v57 = vld [vmem:[#allocation5 + $0x3e0] ss:$16 sps:$4 sm:$0xff]   ;;  %v2565_v58 = vld [vmem:[#allocation5 + $0x3e8] ss:$16 sps:$4 sm:$0xff]  }
  0xe9   :  { %1748 = vmatpush1.bf16.msra.mxu0 %v2478_v6  ;;  %1912 = vmatpush1.bf16.msra.mxu1 %v2481_v59  ;;  %v2573_v6 = vld [vmem:[#allocation5 + $0x40c] ss:$16 sps:$4 sm:$0xff]   ;;  %v150_v59 = vcombine.high %v2927_v56, %v2927_v56 }
  0xea   :  { %1749 = vmatprep.subr.bf16.mxu0 %v2486_v60  ;;  %1913 = vmatprep.subr.bf16.mxu1 %v2489_v61  ;;  %v2568_v60 = vld [vmem:[#allocation5 + $0x400] ss:$16 sps:$4 sm:$0xff]   ;;  %v162_v61 = vpack.c.bf16 %v2918_v51, %v2918_v51 }
  0xeb   :  { %v2580_v51 = vld [vmem:[#allocation5 + $0x440] ss:$16 sps:$4 sm:$0xff]  }
  0xed   :  { %1750 = vmatpush1.bf16.msra.mxu0 %v2484_v62  ;;  %1914 = vmatpush1.bf16.msra.mxu1 %v2487_v63  ;;  %v2571_v62 = vld [vmem:[#allocation5 + $0x408] ss:$16 sps:$4 sm:$0xff]   ;;  %v165_v63 = vpack.c.bf16 %v150_v59, %v150_v59 }
  0xee   :  { %1751 = vmatprep.subr.bf16.mxu0 %v2492_v0  ;;  %1915 = vmatprep.subr.bf16.mxu1 %v2495_v1  ;;  %v2576_v0 = vld [vmem:[#allocation5 + $0x424] ss:$16 sps:$4 sm:$0xff]   ;;  %v2579_v1 = vld [vmem:[#allocation5 + $0x42c] ss:$16 sps:$4 sm:$0xff]   ;;  %v2655_v59 = vld [vmem:[#allocation5 + $0x5c8] ss:$16 sps:$4 sm:$0xff]  }
  0xf1   :  { %1752 = vmatpush1.bf16.msra.mxu0 %v2490_v2  ;;  %1916 = vmatpush1.bf16.msra.mxu1 %v2493_v4  ;;  %v2574_v2 = vld [vmem:[#allocation5 + $0x420] ss:$16 sps:$4 sm:$0xff]   ;;  %v2577_v4 = vld [vmem:[#allocation5 + $0x428] ss:$16 sps:$4 sm:$0xff]  }
  0xf2   :  { %1753 = vmatprep.subr.bf16.mxu0 %v2498_v7  ;;  %1917 = vmatprep.subr.bf16.mxu1 %v2501_v8  ;;  %v2582_v7 = vld [vmem:[#allocation5 + $0x444] ss:$16 sps:$4 sm:$0xff]   ;;  %v2585_v8 = vld [vmem:[#allocation5 + $0x44c] ss:$16 sps:$4 sm:$0xff]  }
  0xf5   :  { %1754 = vmatpush1.bf16.msra.mxu0 %v2496_v9  ;;  %1918 = vmatpush1.bf16.msra.mxu1 %v2499_v10  ;;  %v2583_v9 = vld [vmem:[#allocation5 + $0x448] ss:$16 sps:$4 sm:$0xff]   ;;  %v2588_v10 = vld [vmem:[#allocation5 + $0x464] ss:$16 sps:$4 sm:$0xff]  }
  0xf6   :  { %1755 = vmatprep.subr.bf16.mxu0 %v2504_v11  ;;  %1919 = vmatprep.subr.bf16.mxu1 %v2507_v12  ;;  %v2591_v11 = vld [vmem:[#allocation5 + $0x46c] ss:$16 sps:$4 sm:$0xff]   ;;  %v2586_v12 = vld [vmem:[#allocation5 + $0x460] ss:$16 sps:$4 sm:$0xff]  }
  0xf9   :  { %1756 = vmatpush1.bf16.msra.mxu0 %v2502_v13  ;;  %1920 = vmatpush1.bf16.msra.mxu1 %v2505_v14  ;;  %v2589_v13 = vld [vmem:[#allocation5 + $0x468] ss:$16 sps:$4 sm:$0xff]   ;;  %v2594_v14 = vld [vmem:[#allocation5 + $0x484] ss:$16 sps:$4 sm:$0xff]  }
  0xfa   :  { %1757 = vmatprep.subr.bf16.mxu0 %v2510_v15  ;;  %1921 = vmatprep.subr.bf16.mxu1 %v2513_v16  ;;  %v2597_v15 = vld [vmem:[#allocation5 + $0x48c] ss:$16 sps:$4 sm:$0xff]   ;;  %v2592_v16 = vld [vmem:[#allocation5 + $0x480] ss:$16 sps:$4 sm:$0xff]  }
  0xfd   :  { %1758 = vmatpush1.bf16.msra.mxu0 %v2508_v17  ;;  %1922 = vmatpush1.bf16.msra.mxu1 %v2511_v18  ;;  %v2595_v17 = vld [vmem:[#allocation5 + $0x488] ss:$16 sps:$4 sm:$0xff]   ;;  %v2600_v18 = vld [vmem:[#allocation5 + $0x4a4] ss:$16 sps:$4 sm:$0xff]  }
  0xfe   :  { %1759 = vmatprep.subr.bf16.mxu0 %v2516_v19  ;;  %1923 = vmatprep.subr.bf16.mxu1 %v2519_v20  ;;  %v2603_v19 = vld [vmem:[#allocation5 + $0x4ac] ss:$16 sps:$4 sm:$0xff]   ;;  %v2598_v20 = vld [vmem:[#allocation5 + $0x4a0] ss:$16 sps:$4 sm:$0xff]  }
 0x101   :  { %1760 = vmatpush1.bf16.msra.mxu0 %v2514_v21  ;;  %1924 = vmatpush1.bf16.msra.mxu1 %v2517_v22  ;;  %v2601_v21 = vld [vmem:[#allocation5 + $0x4a8] ss:$16 sps:$4 sm:$0xff]   ;;  %v2606_v22 = vld [vmem:[#allocation5 + $0x4c4] ss:$16 sps:$4 sm:$0xff]  }
 0x102   :  { %1761 = vmatprep.subr.bf16.mxu0 %v2522_v23  ;;  %1925 = vmatprep.subr.bf16.mxu1 %v2525_v24  ;;  %v2609_v23 = vld [vmem:[#allocation5 + $0x4cc] ss:$16 sps:$4 sm:$0xff]   ;;  %v2604_v24 = vld [vmem:[#allocation5 + $0x4c0] ss:$16 sps:$4 sm:$0xff]  }
 0x105   :  { %1762 = vmatpush1.bf16.msra.mxu0 %v2520_v25  ;;  %1926 = vmatpush1.bf16.msra.mxu1 %v2523_v26  ;;  %v2607_v25 = vld [vmem:[#allocation5 + $0x4c8] ss:$16 sps:$4 sm:$0xff]   ;;  %v2612_v26 = vld [vmem:[#allocation5 + $0x4e4] ss:$16 sps:$4 sm:$0xff]  }
 0x106   :  { %1763 = vmatprep.subr.bf16.mxu0 %v2528_v27  ;;  %1927 = vmatprep.subr.bf16.mxu1 %v2531_v28  ;;  %v2615_v27 = vld [vmem:[#allocation5 + $0x4ec] ss:$16 sps:$4 sm:$0xff]   ;;  %v2610_v28 = vld [vmem:[#allocation5 + $0x4e0] ss:$16 sps:$4 sm:$0xff]  }
 0x109   :  { %1764 = vmatpush1.bf16.msra.mxu0 %v2526_v29  ;;  %1928 = vmatpush1.bf16.msra.mxu1 %v2529_v30  ;;  %v2613_v29 = vld [vmem:[#allocation5 + $0x4e8] ss:$16 sps:$4 sm:$0xff]   ;;  %v2618_v30 = vld [vmem:[#allocation5 + $0x504] ss:$16 sps:$4 sm:$0xff]  }
 0x10a   :  { %1765 = vmatprep.subr.bf16.mxu0 %v2534_v31  ;;  %1929 = vmatprep.subr.bf16.mxu1 %v2537_v32  ;;  %v2621_v31 = vld [vmem:[#allocation5 + $0x50c] ss:$16 sps:$4 sm:$0xff]   ;;  %v2616_v32 = vld [vmem:[#allocation5 + $0x500] ss:$16 sps:$4 sm:$0xff]  }
 0x10d   :  { %1766 = vmatpush1.bf16.msra.mxu0 %v2532_v33  ;;  %1930 = vmatpush1.bf16.msra.mxu1 %v2535_v34  ;;  %v2619_v33 = vld [vmem:[#allocation5 + $0x508] ss:$16 sps:$4 sm:$0xff]   ;;  %v2624_v34 = vld [vmem:[#allocation5 + $0x524] ss:$16 sps:$4 sm:$0xff]  }
 0x10e   :  { %1767 = vmatprep.subr.bf16.mxu0 %v2540_v35  ;;  %1931 = vmatprep.subr.bf16.mxu1 %v2543_v36  ;;  %v2627_v35 = vld [vmem:[#allocation5 + $0x52c] ss:$16 sps:$4 sm:$0xff]   ;;  %v2622_v36 = vld [vmem:[#allocation5 + $0x520] ss:$16 sps:$4 sm:$0xff]  }
 0x111   :  { %1768 = vmatpush1.bf16.msra.mxu0 %v2538_v37  ;;  %1932 = vmatpush1.bf16.msra.mxu1 %v2541_v38  ;;  %v2625_v37 = vld [vmem:[#allocation5 + $0x528] ss:$16 sps:$4 sm:$0xff]   ;;  %v2630_v38 = vld [vmem:[#allocation5 + $0x544] ss:$16 sps:$4 sm:$0xff]  }
 0x112   :  { %1769 = vmatprep.subr.bf16.mxu0 %v2546_v39  ;;  %1933 = vmatprep.subr.bf16.mxu1 %v2549_v40  ;;  %v2633_v39 = vld [vmem:[#allocation5 + $0x54c] ss:$16 sps:$4 sm:$0xff]   ;;  %v2628_v40 = vld [vmem:[#allocation5 + $0x540] ss:$16 sps:$4 sm:$0xff]  }
 0x115   :  { %1770 = vmatpush1.bf16.msra.mxu0 %v2544_v41  ;;  %1934 = vmatpush1.bf16.msra.mxu1 %v2547_v42  ;;  %v2631_v41 = vld [vmem:[#allocation5 + $0x548] ss:$16 sps:$4 sm:$0xff]   ;;  %v2636_v42 = vld [vmem:[#allocation5 + $0x564] ss:$16 sps:$4 sm:$0xff]  }
 0x116   :  { %1771 = vmatprep.subr.bf16.mxu0 %v2552_v43  ;;  %1935 = vmatprep.subr.bf16.mxu1 %v2555_v44  ;;  %v2639_v43 = vld [vmem:[#allocation5 + $0x56c] ss:$16 sps:$4 sm:$0xff]   ;;  %v2634_v44 = vld [vmem:[#allocation5 + $0x560] ss:$16 sps:$4 sm:$0xff]  }
 0x119   :  { %1772 = vmatpush1.bf16.msra.mxu0 %v2550_v45  ;;  %1936 = vmatpush1.bf16.msra.mxu1 %v2553_v47  ;;  %v2637_v45 = vld [vmem:[#allocation5 + $0x568] ss:$16 sps:$4 sm:$0xff]   ;;  %v2642_v47 = vld [vmem:[#allocation5 + $0x584] ss:$16 sps:$4 sm:$0xff]  }
 0x11a   :  { %1773 = vmatprep.subr.bf16.mxu0 %v2558_v48  ;;  %1937 = vmatprep.subr.bf16.mxu1 %v2561_v49  ;;  %v2645_v48 = vld [vmem:[#allocation5 + $0x58c] ss:$16 sps:$4 sm:$0xff]   ;;  %v2640_v49 = vld [vmem:[#allocation5 + $0x580] ss:$16 sps:$4 sm:$0xff]  }
 0x11d   :  { %1774 = vmatpush1.bf16.msra.mxu0 %v2556_v53  ;;  %1938 = vmatpush1.bf16.msra.mxu1 %v2559_v54  ;;  %v2648_v53 = vld [vmem:[#allocation5 + $0x5a4] ss:$16 sps:$4 sm:$0xff]   ;;  %v2651_v54 = vld [vmem:[#allocation5 + $0x5ac] ss:$16 sps:$4 sm:$0xff]  }
 0x11e   :  { %1775 = vmatprep.subr.bf16.mxu0 %v2564_v55  ;;  %1939 = vmatprep.subr.bf16.mxu1 %v2567_v3  ;;  %v2646_v55 = vld [vmem:[#allocation5 + $0x5a0] ss:$16 sps:$4 sm:$0xff]   ;;  %v2649_v3 = vld [vmem:[#allocation5 + $0x5a8] ss:$16 sps:$4 sm:$0xff]  }
 0x121   :  { %1776 = vmatpush1.bf16.msra.mxu0 %v2562_v57  ;;  %1940 = vmatpush1.bf16.msra.mxu1 %v2565_v58  ;;  %v2654_v57 = vld [vmem:[#allocation5 + $0x5c4] ss:$16 sps:$4 sm:$0xff]   ;;  %v2657_v58 = vld [vmem:[#allocation5 + $0x5cc] ss:$16 sps:$4 sm:$0xff]  }
 0x122   :  { %1786 = vmatprep.subr.bf16.mxu0 %v2570_v46  ;;  %1950 = vmatprep.subr.bf16.mxu1 %v2573_v6  ;;  %v135_v46 = vcombine.high %v2923_v52, %v2923_v52  ;;  %v2652_v6 = vld [vmem:[#allocation5 + $0x5c0] ss:$16 sps:$4 sm:$0xff]  }
 0x124   :  { %1778 = vmatmul.mubr.bf16.vlgmr.msra.gmra.mrb[0].mxu0 %v162_v61  ;;  %1942 = vmatmul.mubr.bf16.vlgmr.msra.gmra.mrb[0].mxu1 %v162_v61  ;;  %v2663_v61 = vld [vmem:[#allocation5 + $0x5ec] ss:$16 sps:$4 sm:$0xff]  }
 0x125   :  { %1787 = vmatpush1.bf16.msra.mxu0 %v2568_v60  ;;  %1818 = vmatprep.mubr.bf16.mxu0 %v165_v63  ;;  %v2660_v60 = vld [vmem:[#allocation5 + $0x5e4] ss:$16 sps:$4 sm:$0xff]  }
 0x126   :  { %1951 = vmatpush1.bf16.msra.mxu1 %v2571_v62  ;;  %1982 = vmatprep.mubr.bf16.mxu1 %v165_v63  ;;  %v2936_v62 = vrot.slane %v135_v46, %v2893_v5  ;;  %v2658_v63 = vld [vmem:[#allocation5 + $0x5e0] ss:$16 sps:$4 sm:$0xff]   ;;  %v2744_v46 = vld [vmem:[#allocation5 + $0x7a4] ss:$16 sps:$4 sm:$0xff]  }
 0x127   :  { %1788 = vmatprep.subr.bf16.mxu0 %v2576_v0  ;;  %1952 = vmatprep.subr.bf16.mxu1 %v2579_v1  ;;  %v2661_v0 = vld [vmem:[#allocation5 + $0x5e8] ss:$16 sps:$4 sm:$0xff]   ;;  %v2666_v1 = vld [vmem:[#allocation5 + $0x604] ss:$16 sps:$4 sm:$0xff]  }
 0x128   :  { %v151_v52 = vcombine.high %v2936_v62, %v2936_v62 }
 0x129   :  { %1789 = vmatpush1.bf16.msra.mxu0 %v2574_v2  ;;  %v2669_v2 = vld [vmem:[#allocation5 + $0x60c] ss:$16 sps:$4 sm:$0xff]  }
 0x12a   :  { %1953 = vmatpush1.bf16.msra.mxu1 %v2577_v4  ;;  %1790 = vmatprep.subr.bf16.mxu0 %v2582_v7  ;;  %v2664_v4 = vld [vmem:[#allocation5 + $0x600] ss:$16 sps:$4 sm:$0xff]   ;;  %v164_v7 = vpack.c.bf16 %v2927_v56, %v2927_v56 }
 0x12b   :  { %1954 = vmatprep.subr.bf16.mxu1 %v2585_v8  ;;  %v2667_v8 = vld [vmem:[#allocation5 + $0x608] ss:$16 sps:$4 sm:$0xff]   ;;  %v2676_v56 = vld [vmem:[#allocation5 + $0x640] ss:$16 sps:$4 sm:$0xff]  }
 0x12d   :  { %1791 = vmatpush1.bf16.msra.mxu0 %v2580_v51  ;;  %v2672_v51 = vld [vmem:[#allocation5 + $0x624] ss:$16 sps:$4 sm:$0xff]  }
 0x12e   :  { %1955 = vmatpush1.bf16.msra.mxu1 %v2583_v9  ;;  %1792 = vmatprep.subr.bf16.mxu0 %v2588_v10  ;;  %v167_v9 = vpack.c.bf16 %v151_v52, %v151_v52  ;;  %v2675_v10 = vld [vmem:[#allocation5 + $0x62c] ss:$16 sps:$4 sm:$0xff]  }
 0x12f   :  { %1956 = vmatprep.subr.bf16.mxu1 %v2591_v11  ;;  %v2670_v11 = vld [vmem:[#allocation5 + $0x620] ss:$16 sps:$4 sm:$0xff]   ;;  %v2759_v52 = vld [vmem:[#allocation5 + $0x7ec] ss:$16 sps:$4 sm:$0xff]  }
 0x131   :  { %1793 = vmatpush1.bf16.msra.mxu0 %v2586_v12  ;;  %v2673_v12 = vld [vmem:[#allocation5 + $0x628] ss:$16 sps:$4 sm:$0xff]  }
 0x132   :  { %1957 = vmatpush1.bf16.msra.mxu1 %v2589_v13  ;;  %1794 = vmatprep.subr.bf16.mxu0 %v2594_v14  ;;  %v2678_v13 = vld [vmem:[#allocation5 + $0x644] ss:$16 sps:$4 sm:$0xff]   ;;  %v2681_v14 = vld [vmem:[#allocation5 + $0x64c] ss:$16 sps:$4 sm:$0xff]  }
 0x133   :  { %1958 = vmatprep.subr.bf16.mxu1 %v2597_v15  ;;  %v2679_v15 = vld [vmem:[#allocation5 + $0x648] ss:$16 sps:$4 sm:$0xff]  }
 0x135   :  { %1795 = vmatpush1.bf16.msra.mxu0 %v2592_v16  ;;  %v2684_v16 = vld [vmem:[#allocation5 + $0x664] ss:$16 sps:$4 sm:$0xff]  }
 0x136   :  { %1959 = vmatpush1.bf16.msra.mxu1 %v2595_v17  ;;  %1796 = vmatprep.subr.bf16.mxu0 %v2600_v18  ;;  %v2687_v17 = vld [vmem:[#allocation5 + $0x66c] ss:$16 sps:$4 sm:$0xff]   ;;  %v2682_v18 = vld [vmem:[#allocation5 + $0x660] ss:$16 sps:$4 sm:$0xff]  }
 0x137   :  { %1960 = vmatprep.subr.bf16.mxu1 %v2603_v19  ;;  %v2685_v19 = vld [vmem:[#allocation5 + $0x668] ss:$16 sps:$4 sm:$0xff]  }
 0x139   :  { %1797 = vmatpush1.bf16.msra.mxu0 %v2598_v20  ;;  %v2690_v20 = vld [vmem:[#allocation5 + $0x684] ss:$16 sps:$4 sm:$0xff]  }
 0x13a   :  { %1961 = vmatpush1.bf16.msra.mxu1 %v2601_v21  ;;  %1798 = vmatprep.subr.bf16.mxu0 %v2606_v22  ;;  %v2693_v21 = vld [vmem:[#allocation5 + $0x68c] ss:$16 sps:$4 sm:$0xff]   ;;  %v2688_v22 = vld [vmem:[#allocation5 + $0x680] ss:$16 sps:$4 sm:$0xff]  }
 0x13b   :  { %1962 = vmatprep.subr.bf16.mxu1 %v2609_v23  ;;  %v2691_v23 = vld [vmem:[#allocation5 + $0x688] ss:$16 sps:$4 sm:$0xff]  }
 0x13d   :  { %1799 = vmatpush1.bf16.msra.mxu0 %v2604_v24  ;;  %v2696_v24 = vld [vmem:[#allocation5 + $0x6a4] ss:$16 sps:$4 sm:$0xff]  }
 0x13e   :  { %1963 = vmatpush1.bf16.msra.mxu1 %v2607_v25  ;;  %1800 = vmatprep.subr.bf16.mxu0 %v2612_v26  ;;  %v2699_v25 = vld [vmem:[#allocation5 + $0x6ac] ss:$16 sps:$4 sm:$0xff]   ;;  %v2694_v26 = vld [vmem:[#allocation5 + $0x6a0] ss:$16 sps:$4 sm:$0xff]  }
 0x13f   :  { %1964 = vmatprep.subr.bf16.mxu1 %v2615_v27  ;;  %v2697_v27 = vld [vmem:[#allocation5 + $0x6a8] ss:$16 sps:$4 sm:$0xff]  }
 0x141   :  { %1801 = vmatpush1.bf16.msra.mxu0 %v2610_v28  ;;  %v2702_v28 = vld [vmem:[#allocation5 + $0x6c4] ss:$16 sps:$4 sm:$0xff]  }
 0x142   :  { %1965 = vmatpush1.bf16.msra.mxu1 %v2613_v29  ;;  %1802 = vmatprep.subr.bf16.mxu0 %v2618_v30  ;;  %v2705_v29 = vld [vmem:[#allocation5 + $0x6cc] ss:$16 sps:$4 sm:$0xff]   ;;  %v2700_v30 = vld [vmem:[#allocation5 + $0x6c0] ss:$16 sps:$4 sm:$0xff]  }
 0x143   :  { %1966 = vmatprep.subr.bf16.mxu1 %v2621_v31  ;;  %v2703_v31 = vld [vmem:[#allocation5 + $0x6c8] ss:$16 sps:$4 sm:$0xff]  }
 0x145   :  { %1803 = vmatpush1.bf16.msra.mxu0 %v2616_v32  ;;  %v2708_v32 = vld [vmem:[#allocation5 + $0x6e4] ss:$16 sps:$4 sm:$0xff]  }
 0x146   :  { %1967 = vmatpush1.bf16.msra.mxu1 %v2619_v33  ;;  %1804 = vmatprep.subr.bf16.mxu0 %v2624_v34  ;;  %v2711_v33 = vld [vmem:[#allocation5 + $0x6ec] ss:$16 sps:$4 sm:$0xff]   ;;  %v2706_v34 = vld [vmem:[#allocation5 + $0x6e0] ss:$16 sps:$4 sm:$0xff]  }
 0x147   :  { %1968 = vmatprep.subr.bf16.mxu1 %v2627_v35  ;;  %v2709_v35 = vld [vmem:[#allocation5 + $0x6e8] ss:$16 sps:$4 sm:$0xff]  }
 0x149   :  { %1805 = vmatpush1.bf16.msra.mxu0 %v2622_v36  ;;  %v2714_v36 = vld [vmem:[#allocation5 + $0x704] ss:$16 sps:$4 sm:$0xff]  }
 0x14a   :  { %1969 = vmatpush1.bf16.msra.mxu1 %v2625_v37  ;;  %1806 = vmatprep.subr.bf16.mxu0 %v2630_v38  ;;  %v2717_v37 = vld [vmem:[#allocation5 + $0x70c] ss:$16 sps:$4 sm:$0xff]   ;;  %v2712_v38 = vld [vmem:[#allocation5 + $0x700] ss:$16 sps:$4 sm:$0xff]  }
 0x14b   :  { %1970 = vmatprep.subr.bf16.mxu1 %v2633_v39  ;;  %v2715_v39 = vld [vmem:[#allocation5 + $0x708] ss:$16 sps:$4 sm:$0xff]  }
 0x14d   :  { %1807 = vmatpush1.bf16.msra.mxu0 %v2628_v40  ;;  %v2720_v40 = vld [vmem:[#allocation5 + $0x724] ss:$16 sps:$4 sm:$0xff]  }
 0x14e   :  { %1971 = vmatpush1.bf16.msra.mxu1 %v2631_v41  ;;  %1808 = vmatprep.subr.bf16.mxu0 %v2636_v42  ;;  %v2723_v41 = vld [vmem:[#allocation5 + $0x72c] ss:$16 sps:$4 sm:$0xff]   ;;  %v2718_v42 = vld [vmem:[#allocation5 + $0x720] ss:$16 sps:$4 sm:$0xff]  }
 0x14f   :  { %1972 = vmatprep.subr.bf16.mxu1 %v2639_v43  ;;  %v2721_v43 = vld [vmem:[#allocation5 + $0x728] ss:$16 sps:$4 sm:$0xff]  }
 0x151   :  { %1809 = vmatpush1.bf16.msra.mxu0 %v2634_v44  ;;  %v2726_v44 = vld [vmem:[#allocation5 + $0x744] ss:$16 sps:$4 sm:$0xff]  }
 0x152   :  { %1973 = vmatpush1.bf16.msra.mxu1 %v2637_v45  ;;  %1810 = vmatprep.subr.bf16.mxu0 %v2642_v47  ;;  %v2729_v45 = vld [vmem:[#allocation5 + $0x74c] ss:$16 sps:$4 sm:$0xff]   ;;  %v2724_v47 = vld [vmem:[#allocation5 + $0x740] ss:$16 sps:$4 sm:$0xff]  }
 0x153   :  { %1974 = vmatprep.subr.bf16.mxu1 %v2645_v48  ;;  %v2727_v48 = vld [vmem:[#allocation5 + $0x748] ss:$16 sps:$4 sm:$0xff]  }
 0x155   :  { %1811 = vmatpush1.bf16.msra.mxu0 %v2640_v49  ;;  %v2732_v49 = vld [vmem:[#allocation5 + $0x764] ss:$16 sps:$4 sm:$0xff]  }
 0x156   :  { %1975 = vmatpush1.bf16.msra.mxu1 %v2643_v50  ;;  %1812 = vmatprep.subr.bf16.mxu0 %v2648_v53  ;;  %v2735_v50 = vld [vmem:[#allocation5 + $0x76c] ss:$16 sps:$4 sm:$0xff]   ;;  %v2730_v53 = vld [vmem:[#allocation5 + $0x760] ss:$16 sps:$4 sm:$0xff]  }
 0x157   :  { %1976 = vmatprep.subr.bf16.mxu1 %v2651_v54  ;;  %v2733_v54 = vld [vmem:[#allocation5 + $0x768] ss:$16 sps:$4 sm:$0xff]  }
 0x159   :  { %1813 = vmatpush1.bf16.msra.mxu0 %v2646_v55  ;;  %v2738_v55 = vld [vmem:[#allocation5 + $0x784] ss:$16 sps:$4 sm:$0xff]  }
 0x15a   :  { %1977 = vmatpush1.bf16.msra.mxu1 %v2649_v3  ;;  %1814 = vmatprep.subr.bf16.mxu0 %v2654_v57  ;;  %v2741_v3 = vld [vmem:[#allocation5 + $0x78c] ss:$16 sps:$4 sm:$0xff]   ;;  %v2736_v57 = vld [vmem:[#allocation5 + $0x780] ss:$16 sps:$4 sm:$0xff]  }
 0x15b   :  { %1978 = vmatprep.subr.bf16.mxu1 %v2657_v58  ;;  %v2739_v58 = vld [vmem:[#allocation5 + $0x788] ss:$16 sps:$4 sm:$0xff]  }
 0x15d   :  { %1815 = vmatpush1.bf16.msra.mxu0 %v2652_v6  ;;  %v2747_v6 = vld [vmem:[#allocation5 + $0x7ac] ss:$16 sps:$4 sm:$0xff]  }
 0x15e   :  { %1979 = vmatpush1.bf16.msra.mxu1 %v2655_v59  ;;  %1816 = vmatprep.subr.bf16.mxu0 %v2660_v60  ;;  %v2742_v59 = vld [vmem:[#allocation5 + $0x7a0] ss:$16 sps:$4 sm:$0xff]   ;;  %v2745_v60 = vld [vmem:[#allocation5 + $0x7a8] ss:$16 sps:$4 sm:$0xff]  }
 0x15f   :  { %1980 = vmatprep.subr.bf16.mxu1 %v2663_v61  ;;  %v2750_v61 = vld [vmem:[#allocation5 + $0x7c4] ss:$16 sps:$4 sm:$0xff]  }
 0x161   :  { %1817 = vmatpush1.bf16.msra.mxu0 %v2658_v63  ;;  %v2753_v63 = vld [vmem:[#allocation5 + $0x7cc] ss:$16 sps:$4 sm:$0xff]  }
 0x162   :  { %1981 = vmatpush1.bf16.msra.mxu1 %v2661_v0  ;;  %1827 = vmatprep.subr.bf16.mxu0 %v2666_v1  ;;  %v2748_v0 = vld [vmem:[#allocation5 + $0x7c0] ss:$16 sps:$4 sm:$0xff]   ;;  %v2751_v1 = vld [vmem:[#allocation5 + $0x7c8] ss:$16 sps:$4 sm:$0xff]  }
 0x163   :  { %1991 = vmatprep.subr.bf16.mxu1 %v2669_v2  ;;  %v2756_v2 = vld [vmem:[#allocation5 + $0x7e4] ss:$16 sps:$4 sm:$0xff]  }
 0x164   :  { %1819 = vmatmul.mubr.bf16.vlgmr.msra.gmra.mrb[0].mxu0 %v164_v7 }
 0x165   :  { %1983 = vmatmul.mubr.bf16.vlgmr.msra.gmra.mrb[0].mxu1 %v164_v7  ;;  %1828 = vmatpush1.bf16.msra.mxu0 %v2664_v4  ;;  %v2754_v4 = vld [vmem:[#allocation5 + $0x7e0] ss:$16 sps:$4 sm:$0xff]   ;;  %v2757_v7 = vld [vmem:[#allocation5 + $0x7e8] ss:$16 sps:$4 sm:$0xff]  }
 0x166   :  { %1859 = vmatprep.mubr.bf16.mxu0 %v167_v9  ;;  %1992 = vmatpush1.bf16.msra.mxu1 %v2667_v8  ;;  %v166_v8 = vpack.c.bf16 %v2936_v62, %v2936_v62 }
 0x167   :  { %2023 = vmatprep.mubr.bf16.mxu1 %v167_v9  ;;  %1829 = vmatprep.subr.bf16.mxu0 %v2672_v51 }
 0x168   :  { %1993 = vmatprep.subr.bf16.mxu1 %v2675_v10 }
 0x169   :  { %1830 = vmatpush1.bf16.msra.mxu0 %v2670_v11 }
 0x16a   :  { %1994 = vmatpush1.bf16.msra.mxu1 %v2673_v12  ;;  %1831 = vmatprep.subr.bf16.mxu0 %v2678_v13 }
 0x16b   :  { %1995 = vmatprep.subr.bf16.mxu1 %v2681_v14 }
 0x16d   :  { %1832 = vmatpush1.bf16.msra.mxu0 %v2676_v56 }
 0x16e   :  { %1996 = vmatpush1.bf16.msra.mxu1 %v2679_v15  ;;  %1833 = vmatprep.subr.bf16.mxu0 %v2684_v16 }
 0x16f   :  { %1997 = vmatprep.subr.bf16.mxu1 %v2687_v17 }
 0x171   :  { %1834 = vmatpush1.bf16.msra.mxu0 %v2682_v18 }
 0x172   :  { %1998 = vmatpush1.bf16.msra.mxu1 %v2685_v19  ;;  %1835 = vmatprep.subr.bf16.mxu0 %v2690_v20 }
 0x173   :  { %1999 = vmatprep.subr.bf16.mxu1 %v2693_v21 }
 0x175   :  { %1836 = vmatpush1.bf16.msra.mxu0 %v2688_v22 }
 0x176   :  { %2000 = vmatpush1.bf16.msra.mxu1 %v2691_v23  ;;  %1837 = vmatprep.subr.bf16.mxu0 %v2696_v24 }
 0x177   :  { %2001 = vmatprep.subr.bf16.mxu1 %v2699_v25 }
 0x179   :  { %1838 = vmatpush1.bf16.msra.mxu0 %v2694_v26 }
 0x17a   :  { %2002 = vmatpush1.bf16.msra.mxu1 %v2697_v27  ;;  %1839 = vmatprep.subr.bf16.mxu0 %v2702_v28 }
 0x17b   :  { %2003 = vmatprep.subr.bf16.mxu1 %v2705_v29 }
 0x17d   :  { %1840 = vmatpush1.bf16.msra.mxu0 %v2700_v30 }
 0x17e   :  { %2004 = vmatpush1.bf16.msra.mxu1 %v2703_v31  ;;  %1841 = vmatprep.subr.bf16.mxu0 %v2708_v32 }
 0x17f   :  { %2005 = vmatprep.subr.bf16.mxu1 %v2711_v33 }
 0x181   :  { %1842 = vmatpush1.bf16.msra.mxu0 %v2706_v34 }
 0x182   :  { %2006 = vmatpush1.bf16.msra.mxu1 %v2709_v35  ;;  %1843 = vmatprep.subr.bf16.mxu0 %v2714_v36 }
 0x183   :  { %2007 = vmatprep.subr.bf16.mxu1 %v2717_v37 }
 0x185   :  { %1844 = vmatpush1.bf16.msra.mxu0 %v2712_v38 }
 0x186   :  { %2008 = vmatpush1.bf16.msra.mxu1 %v2715_v39  ;;  %1845 = vmatprep.subr.bf16.mxu0 %v2720_v40 }
 0x187   :  { %2009 = vmatprep.subr.bf16.mxu1 %v2723_v41 }
 0x189   :  { %1846 = vmatpush1.bf16.msra.mxu0 %v2718_v42 }
 0x18a   :  { %2010 = vmatpush1.bf16.msra.mxu1 %v2721_v43  ;;  %1847 = vmatprep.subr.bf16.mxu0 %v2726_v44 }
 0x18b   :  { %2011 = vmatprep.subr.bf16.mxu1 %v2729_v45 }
 0x18d   :  { %1848 = vmatpush1.bf16.msra.mxu0 %v2724_v47 }
 0x18e   :  { %2012 = vmatpush1.bf16.msra.mxu1 %v2727_v48  ;;  %1849 = vmatprep.subr.bf16.mxu0 %v2732_v49 }
 0x18f   :  { %2013 = vmatprep.subr.bf16.mxu1 %v2735_v50 }
 0x191   :  { %1850 = vmatpush1.bf16.msra.mxu0 %v2730_v53 }
 0x192   :  { %2014 = vmatpush1.bf16.msra.mxu1 %v2733_v54  ;;  %1851 = vmatprep.subr.bf16.mxu0 %v2738_v55 }
 0x193   :  { %2015 = vmatprep.subr.bf16.mxu1 %v2741_v3 }
 0x195   :  { %1852 = vmatpush1.bf16.msra.mxu0 %v2736_v57 }
 0x196   :  { %2016 = vmatpush1.bf16.msra.mxu1 %v2739_v58  ;;  %1853 = vmatprep.subr.bf16.mxu0 %v2744_v46 }
 0x197   :  { %2017 = vmatprep.subr.bf16.mxu1 %v2747_v6 }
 0x199   :  { %1854 = vmatpush1.bf16.msra.mxu0 %v2742_v59 }
 0x19a   :  { %2018 = vmatpush1.bf16.msra.mxu1 %v2745_v60  ;;  %1855 = vmatprep.subr.bf16.mxu0 %v2750_v61 }
 0x19b   :  { %2019 = vmatprep.subr.bf16.mxu1 %v2753_v63 }
 0x19d   :  { %1856 = vmatpush1.bf16.msra.mxu0 %v2748_v0 }
 0x19e   :  { %2020 = vmatpush1.bf16.msra.mxu1 %v2751_v1  ;;  %1857 = vmatprep.subr.bf16.mxu0 %v2756_v2 }
 0x19f   :  { %2021 = vmatprep.subr.bf16.mxu1 %v2759_v52 }
 0x1a1   :  { %1858 = vmatpush1.bf16.msra.mxu0 %v2754_v4 }
 0x1a2   :  { %2022 = vmatpush1.bf16.msra.mxu1 %v2757_v7 }
 0x1a4   :  { %1860 = vmatmul.mubr.bf16.vlgmr.msra.gmra.mrb[0].mxu0 %v166_v8 }
 0x1a5   :  { %2024 = vmatmul.mubr.bf16.vlgmr.msra.gmra.mrb[0].mxu1 %v166_v8 }
 0x277   :  { %v1861_v51 = vpop.f32.mrb[0].mxu0 }
 0x278   :  { %v2032_v9 = vmul.f32 %v1861_v51, %v1861_v51  ;;  %v2025_v10 = vpop.f32.mrb[0].mxu1  ;;  %v1863_v11 = vpop.f32.mrb[1].mxu0 }
 0x279   :  { %v2034_v12 = vmul.f32 %v2025_v10, %v2025_v10  ;;  %v2033_v13 = vmul.f32 %v1863_v11, %v1863_v11  ;;  %v2027_v14 = vpop.f32.mrb[1].mxu1  ;;  %v1865_v56 = vpop.f32.mrb[2].mxu0 }
 0x27a   :  { %v2036_v15 = vsel %vm86_vm0, %v2032_v9, 0.0  ;;  %v2029_v16 = vpop.f32.mrb[2].mxu1  ;;  %v1866_v17 = vpop.f32.mrb[3].mxu0  ;;  %v2035_v19 = vmul.f32 %v2027_v14, %v2027_v14 }
 0x27b   :  { %v2037_v18 = vsel %vm86_vm0, %v2033_v13, 0.0  ;;  %v2030_v20 = vpop.f32.mrb[3].mxu1  ;;  %v2039_v62 = vsel %vm86_vm0, %v2034_v12, 0.0 }
 0x27c   :  { %v2038_v21 = vadd.f32 %v2037_v18, %v2036_v15  ;;  %v2041_v23 = vsel %vm86_vm0, %v2035_v19, 0.0 }
 0x27e   :  { %v2040_v22 = vadd.f32 %v2039_v62, %v2038_v21 }
 0x280   :  { %v2042_v24 = vadd.f32 %v2041_v23, %v2040_v22 }
 0x282   :  { %2043 = vadd.xlane.f32.xlu0 %v2042_v24 }
 0x30f   :  { %v2044_v25 = vpop.xlane.xlu0 %2043 }
 0x310   :  { %2762 = vrsqrt.f32 %v2044_v25 }
 0x31a   :  { %v2763_v26 = vpop.eup %2762 }
 0x31b   :  { %v2046_v27 = vmul.f32 %v2763_v26, %v1861_v51  ;;  %v2047_v28 = vmul.f32 %v2763_v26, %v1863_v11  ;;  %v2048_v29 = vmul.f32 %v2763_v26, %v2025_v10  ;;  %v2049_v30 = vmul.f32 %v2763_v26, %v2027_v14 }
 0x31d   :  { %v2054_v31 = vcombine.low %v2046_v27, %v2047_v28  ;;  %v2055_v32 = vcombine.low %v2048_v29, %v2049_v30 }
 0x31f   :  { %v2062_v33 = vrot.slane %v2054_v31, %v2893_v5  ;;  %v2069_v34 = vrot.slane %v2055_v32, %v2893_v5 }
 0x321   :  { %v2070_v35 = vcombine.low %v2062_v33, %v2069_v34 }
 0x323   :  { %2072 = vst [vmem:[#allocation7] sm:$0xff] %v2070_v35 }
 0x324   :  { %2820 = shalt.err (!%p2817_p6)
}
 0x325   :  { %s2821_s10 = scalar_lea.hbm %s2964_s2, 128 }
 0x326   :  { %p2822_p7 = scmp.ne.s32.totalorder %s2964_s2, %s2821_s10  ;;  %p2825_p8 = scmp.lt.u32.totalorder %s2821_s10, %s2964_s2 }
 0x328   :  { %p2827_p9 = pnand %p2825_p8, %p2822_p7 }
 0x32a   :  { %2830 = shalt.err (!%p2827_p9)
}
 0x32b   :  { %2082 = dma.vmem_to_hbm [thread:$0]  %s2080_s6, 128, %s2964_s2, [#allocation4]  }
 0x32c   :  { %2835 = dma.done.wait [#allocation4], 128  }
 0x32d   :  { %2836 = vsyncadd [#allocation4], 4294967168 }
 0x32e   :  { %2086 = vsyncpa [#allocation3], 1 }
 0x32f   :  { %2087 = vsyncpa [#allocation6], 1 }
 0x330   :  { %2088 = vsyncpa [#allocation4], 1 }

</bundles_post_ra>
